<compile_context>
chip_gen: v7x
topology: tpu7x:2x2x1
jax: 0.10.0
libtpu: 0.0.40
codegen_flags: <defaults>
</compile_context>

<pallas_src>
import functools
from math import sqrt

import jax
import jax.numpy as jnp
from jax.experimental import pallas as pl
from jax.experimental.pallas import tpu as pltpu


def _cell_kernel(comb_ref, cx_ref, w_ref, hy_ref, cy_ref, patch_ref,
                 *, H, W, Ch, Cp, K, NB):
    M = H * W
    NM = NB * M
    p = K // 2
    off0 = p * W + p

    # Ones row (folded bias): multiplies the bias column appended to w.
    patch_ref[K * K * Cp:K * K * Cp + 1, :] = jnp.ones((1, NM), patch_ref.dtype)

    # Hoisted width-wrap masks: identical for every kh, only depend on dw.
    w_idx = jax.lax.broadcasted_iota(jnp.int32, (1, M), 1) % W
    masks = {dw: (w_idx + dw >= 0) & (w_idx + dw < W)
             for dw in range(-p, p + 1) if dw != 0}

    # Assemble the im2col patch tap-by-tap into VMEM scratch.  Each tap is a
    # static lane-offset slice of the zero-padded flattened input; row blocks
    # are multiples of Cp=16 (one bf16 vreg row-group), lane blocks multiples
    # of M=256 (128-aligned) -> relayout-free stores.
    for b in range(NB):
        comb_b = comb_ref[b]                                   # (Cp, Mp) bf16
        for kh in range(K):
            for kw in range(K):
                dh, dw = kh - p, kw - p
                s = dh * W + dw
                sl = comb_b[:, off0 + s: off0 + s + M]         # (Cp, M) bf16
                if dw != 0:
                    # width-wrap mask in f32 (v5e-safe), then re-pack to bf16
                    sl = jnp.where(masks[dw], sl.astype(jnp.float32),
                                   0.0).astype(patch_ref.dtype)
                row0 = (kh * K + kw) * Cp
                patch_ref[row0:row0 + Cp, b * M:(b + 1) * M] = sl

    # Single fused MXU matmul (bias included): bf16 operands, f32 accumulate.
    gates = jnp.dot(w_ref[...], patch_ref[...],
                    preferred_element_type=jnp.float32)        # (4*Ch, NB*M)

    def sigmoid(v):                                            # one EUP op
        return 0.5 * jnp.tanh(0.5 * v) + 0.5

    ingate     = sigmoid(gates[0 * Ch:1 * Ch])                 # 8-row aligned
    forgetgate = sigmoid(gates[1 * Ch:2 * Ch])
    cellgate   = jnp.tanh(gates[2 * Ch:3 * Ch])
    outgate    = sigmoid(gates[3 * Ch:4 * Ch])

    # cx laid out batch-major along lanes (256-lane pieces -> aligned concat).
    cxf = jnp.concatenate([cx_ref[b] for b in range(NB)],
                          axis=1).astype(jnp.float32)          # (Ch, NB*M)
    cy = forgetgate * cxf + ingate * cellgate
    hy = outgate * jnp.tanh(cy)

    for b in range(NB):                                        # 256-lane dense stores
        hy_ref[b] = hy[:, b * M:(b + 1) * M].astype(hy_ref.dtype)
        cy_ref[b] = cy[:, b * M:(b + 1) * M].astype(cy_ref.dtype)


def conv_lstm_cell(x, hx, cx, weight, bias, *, batch_block=None):
    """Pallas ConvLSTM cell.

    x      : (N, Cin, H, W)          NCHW (PyTorch convention)
    hx, cx : (N, Ch,  H, W)          NCHW
    weight : (4*Ch, Cin+Ch, K, K)    OIHW (PyTorch conv weight)
    bias   : (4*Ch,)
    batch_block : batch items folded into one grid step.  Default folds the
        whole (small) batch into a single step (best on 1-TC v5e/v6e); on v7x
        pass ceil(N/2) so both TensorCores get a step.
    returns (hy, cy), each (N, Ch, H, W) NCHW.
    """
    N, Cin, H, W = x.shape
    Ch = hx.shape[1]
    K = weight.shape[-1]
    p = K // 2
    C = Cin + Ch
    Cp = ((C + 15) // 16) * 16            # pad channels to a bf16 vreg row-group
    M = H * W
    off0 = p * W + p
    Mp = M + 2 * off0

    NB = batch_block if batch_block is not None else min(N, 8)
    G = -(-N // NB)                        # ceil(N / NB) grid steps
    Np = G * NB

    # Pre-concatenate x|hx along channels, zero-pad channels C->Cp and the
    # flattened spatial axis by off0 on each side (every conv tap becomes a
    # static lane-offset slice); bf16 to halve input DMA / feed the MXU.
    comb = jnp.concatenate([x.reshape(N, Cin, M), hx.reshape(N, Ch, M)], axis=1)
    comb = jnp.pad(comb, ((0, Np - N), (0, Cp - C), (off0, off0)))
    comb = comb.astype(jnp.bfloat16)                            # (Np, Cp, Mp)

    cx_flat = cx.reshape(N, Ch, M)                              # pure reshape
    if Np != N:
        cx_flat = jnp.pad(cx_flat, ((0, Np - N), (0, 0), (0, 0)))

    # Conv weight OIHW -> (O, kh, kw, Cp) -> (O, K*K*Cp) + bias column (matched
    # by the ones row in the patch).  Column order (kh, kw, c) matches the
    # in-kernel patch row order.
    w_t = jnp.transpose(weight, (0, 2, 3, 1))                   # (O, K, K, C)
    w_t = jnp.pad(w_t, ((0, 0), (0, 0), (0, 0), (0, Cp - C)))
    w_t = w_t.reshape(4 * Ch, K * K * Cp)
    w_t = jnp.concatenate([w_t, bias.reshape(4 * Ch, 1)], axis=1)
    w_t = w_t.astype(jnp.bfloat16)                              # (4*Ch, K*K*Cp+1)

    kernel = functools.partial(_cell_kernel, H=H, W=W, Ch=Ch, Cp=Cp, K=K, NB=NB)

    # Everything here is tiny (<1 MiB per step); for production H*W / channel
    # counts the flattened-spatial axis would be lane-tiled with a (p*W+p)
    # halo and vmem_limit_bytes budgeted against v7x's 64 MiB VMEM.
    hy, cy = pl.pallas_call(
        kernel,
        out_shape=(jax.ShapeDtypeStruct((Np, Ch, M), x.dtype),
                   jax.ShapeDtypeStruct((Np, Ch, M), x.dtype)),
        grid=(G,),
        in_specs=[
            pl.BlockSpec((NB, Cp, Mp), lambda g: (g, 0, 0)),
            pl.BlockSpec((NB, Ch, M), lambda g: (g, 0, 0)),
            pl.BlockSpec((4 * Ch, K * K * Cp + 1), lambda g: (0, 0)),  # resident
        ],
        out_specs=(
            pl.BlockSpec((NB, Ch, M), lambda g: (g, 0, 0)),
            pl.BlockSpec((NB, Ch, M), lambda g: (g, 0, 0)),
        ),
        scratch_shapes=[pltpu.VMEM((K * K * Cp + 1, NB * M), jnp.bfloat16)],
        compiler_params=pltpu.CompilerParams(
            dimension_semantics=("parallel",)),
    )(comb, cx_flat, w_t)

    # Pure reshape back to NCHW (drop any batch padding first).
    return hy[:N].reshape(N, Ch, H, W), cy[:N].reshape(N, Ch, H, W)


def _reference_forward(x, hx, cx, weight, bias, *, matmul_dtype=jnp.float32):
    """Pure-JAX (XLA conv) reference mirroring the PyTorch module.

    matmul_dtype=bfloat16 reproduces the kernel's bf16-operand / f32-accumulate
    MXU quantization for a tight numerical comparison.
    """
    combined = jnp.concatenate([x, hx], axis=1).astype(matmul_dtype)
    gates = jax.lax.conv_general_dilated(
        combined, weight.astype(matmul_dtype), window_strides=(1, 1),
        padding="SAME", dimension_numbers=("NCHW", "OIHW", "NCHW"),
        preferred_element_type=jnp.float32)
    gates = gates + bias[None, :, None, None]
    ingate, forgetgate, cellgate, outgate = jnp.split(gates, 4, axis=1)
    ingate = jax.nn.sigmoid(ingate)
    forgetgate = jax.nn.sigmoid(forgetgate)
    cellgate = jnp.tanh(cellgate)
    outgate = jax.nn.sigmoid(outgate)
    cy = forgetgate * cx + ingate * cellgate
    hy = outgate * jnp.tanh(cy)
    return hy, cy


if __name__ == "__main__":
    N, Cin, Ch, H, W, K = 2, 4, 8, 16, 16, 3

    key = jax.random.PRNGKey(0)
    k1, k2, k3, k4, k5 = jax.random.split(key, 5)

    x = jax.random.normal(k1, (N, Cin, H, W), jnp.float32)
    hx = jax.random.normal(k2, (N, Ch, H, W), jnp.float32)
    cx = jax.random.normal(k3, (N, Ch, H, W), jnp.float32)

    # PyTorch nn.Conv2d default init: U(-1/sqrt(fan_in), 1/sqrt(fan_in))
    fan_in = (Cin + Ch) * K * K
    bound = 1.0 / sqrt(fan_in)
    weight = jax.random.uniform(k4, (4 * Ch, Cin + Ch, K, K), jnp.float32,
                                -bound, bound)
    bias = jax.random.uniform(k5, (4 * Ch,), jnp.float32, -bound, bound)

    hy, cy = jax.jit(conv_lstm_cell)(x, hx, cx, weight, bias)
    jax.block_until_ready((hy, cy))

    assert hy.shape == (N, Ch, H, W) and cy.shape == (N, Ch, H, W)

    # Tight check vs a reference using the same bf16-operand MXU quantization.
    hy_q, cy_q = _reference_forward(x, hx, cx, weight, bias,
                                    matmul_dtype=jnp.bfloat16)
    assert jnp.allclose(hy, hy_q, atol=5e-3, rtol=5e-3)
    assert jnp.allclose(cy, cy_q, atol=5e-3, rtol=5e-3)

    # Loose semantic check vs the exact f32 PyTorch-equivalent (difference is
    # bounded by the bf16 matmul-operand quantization).
    hy_f, cy_f = _reference_forward(x, hx, cx, weight, bias)
    assert jnp.allclose(hy, hy_f, atol=5e-2, rtol=5e-2)
    assert jnp.allclose(cy, cy_f, atol=5e-2, rtol=5e-2)

    print("KERNEL_OK")
</pallas_src>

<mosaic_0001>
module attributes {stable_mosaic.version = 11 : i64} {
  func.func @_cell_kernel(%arg0: i32, %arg1: memref<2x16x290xbf16, #tpu.memory_space<vmem>>, %arg2: memref<2x8x256xf32, #tpu.memory_space<vmem>>, %arg3: memref<32x145xbf16, #tpu.memory_space<vmem>>, %arg4: memref<2x8x256xf32, #tpu.memory_space<vmem>>, %arg5: memref<2x8x256xf32, #tpu.memory_space<vmem>>, %arg6: memref<145x512xbf16, #tpu.memory_space<vmem>>) attributes {dimension_semantics = [#tpu.dimension_semantics<parallel>], iteration_bounds = array<i64: 1>, scalar_prefetch = 0 : i64, scratch_operands = 1 : i64, tpu.core_type = #tpu.core_type<tc>, window_params = [{transform_indices = @transform_0, window_bounds = array<i64: 2, 16, 290>}, {transform_indices = @transform_1, window_bounds = array<i64: 2, 8, 256>}, {pipeline_mode = #tpu.pipeline_mode<synchronous>, transform_indices = @transform_2, window_bounds = array<i64: 32, 145>}, {transform_indices = @transform_3, window_bounds = array<i64: 2, 8, 256>}, {transform_indices = @transform_4, window_bounds = array<i64: 2, 8, 256>}]} {
    %cst = arith.constant 1.000000e+00 : bf16
    %0 = vector.broadcast %cst : bf16 to vector<1x512xbf16>
    %c144 = arith.constant 144 : index
    %c0 = arith.constant 0 : index
    %1 = vector.load %arg6[%c144, %c0] : memref<145x512xbf16, #tpu.memory_space<vmem>>, vector<1x512xbf16>
    tpu.vector_store %arg6[%c144, %c0], %0 {strides = array<i32>} : memref<145x512xbf16, #tpu.memory_space<vmem>>, vector<1x512xbf16>,
    %2 = tpu.iota {dimensions = array<i32: 1>} : vector<1x256xi32>
    %c16_i32 = arith.constant 16 : i32
    %c0_i32 = arith.constant 0 : i32
    %3 = arith.cmpi eq, %c16_i32, %c0_i32 : i32
    %c1_i32 = arith.constant 1 : i32
    %4 = arith.select %3, %c1_i32, %c16_i32 : i32
    %5 = vector.broadcast %4 : i32 to vector<1x256xi32>
    %6 = arith.remsi %2, %5 : vector<1x256xi32>
    %c0_i32_0 = arith.constant 0 : i32
    %7 = vector.broadcast %c0_i32_0 : i32 to vector<1x256xi32>
    %8 = arith.cmpi ne, %6, %7 : vector<1x256xi32>
    %c0_i32_1 = arith.constant 0 : i32
    %9 = vector.broadcast %c0_i32_1 : i32 to vector<1x256xi32>
    %10 = arith.cmpi slt, %6, %9 : vector<1x256xi32>
    %c0_i32_2 = arith.constant 0 : i32
    %11 = arith.cmpi slt, %4, %c0_i32_2 : i32
    %12 = vector.broadcast %11 : i1 to vector<1x256xi1>
    %13 = vector.broadcast %12 : vector<1x256xi1> to vector<1x256xi1>
    %14 = arith.xori %10, %13 : vector<1x256xi1>
    %15 = arith.andi %14, %8 : vector<1x256xi1>
    %16 = vector.broadcast %4 : i32 to vector<1x256xi32>
    %17 = arith.addi %6, %16 : vector<1x256xi32>
    %18 = arith.select %15, %17, %6 : vector<1x256xi1>, vector<1x256xi32>
    %c-1_i32 = arith.constant -1 : i32
    %19 = vector.broadcast %c-1_i32 : i32 to vector<1x256xi32>
    %20 = arith.addi %18, %19 : vector<1x256xi32>
    %c0_i32_3 = arith.constant 0 : i32
    %21 = vector.broadcast %c0_i32_3 : i32 to vector<1x256xi32>
    %22 = arith.cmpi sge, %20, %21 : vector<1x256xi32>
    %c-1_i32_4 = arith.constant -1 : i32
    %23 = vector.broadcast %c-1_i32_4 : i32 to vector<1x256xi32>
    %24 = arith.addi %18, %23 : vector<1x256xi32>
    %c16_i32_5 = arith.constant 16 : i32
    %25 = vector.broadcast %c16_i32_5 : i32 to vector<1x256xi32>
    %26 = arith.cmpi slt, %24, %25 : vector<1x256xi32>
    %27 = arith.andi %22, %26 : vector<1x256xi1>
    %c1_i32_6 = arith.constant 1 : i32
    %28 = vector.broadcast %c1_i32_6 : i32 to vector<1x256xi32>
    %29 = arith.addi %18, %28 : vector<1x256xi32>
    %c0_i32_7 = arith.constant 0 : i32
    %30 = vector.broadcast %c0_i32_7 : i32 to vector<1x256xi32>
    %31 = arith.cmpi sge, %29, %30 : vector<1x256xi32>
    %c1_i32_8 = arith.constant 1 : i32
    %32 = vector.broadcast %c1_i32_8 : i32 to vector<1x256xi32>
    %33 = arith.addi %18, %32 : vector<1x256xi32>
    %c16_i32_9 = arith.constant 16 : i32
    %34 = vector.broadcast %c16_i32_9 : i32 to vector<1x256xi32>
    %35 = arith.cmpi slt, %33, %34 : vector<1x256xi32>
    %36 = arith.andi %31, %35 : vector<1x256xi1>
    %c0_10 = arith.constant 0 : index
    %c0_11 = arith.constant 0 : index
    %c0_12 = arith.constant 0 : index
    %37 = vector.load %arg1[%c0_10, %c0_11, %c0_12] : memref<2x16x290xbf16, #tpu.memory_space<vmem>>, vector<1x16x290xbf16>
    %38 = vector.shape_cast %37 : vector<1x16x290xbf16> to vector<16x290xbf16>
    %39 = vector.extract_strided_slice %38 {offsets = [0, 0], sizes = [16, 256], strides = [1, 1]} : vector<16x290xbf16> to vector<16x256xbf16>
    %40 = arith.extf %39 : vector<16x256xbf16> to vector<16x256xf32>
    %cst_13 = arith.constant 0.000000e+00 : f32
    %41 = vector.shape_cast %27 : vector<1x256xi1> to vector<1x256xi1>
    %42 = vector.broadcast %41 : vector<1x256xi1> to vector<16x256xi1>
    %43 = vector.broadcast %cst_13 : f32 to vector<16x256xf32>
    %44 = arith.select %42, %40, %43 : vector<16x256xi1>, vector<16x256xf32>
    %45 = arith.truncf %44 : vector<16x256xf32> to vector<16x256xbf16>
    %c0_14 = arith.constant 0 : index
    %c0_15 = arith.constant 0 : index
    %46 = vector.load %arg6[%c0_14, %c0_15] : memref<145x512xbf16, #tpu.memory_space<vmem>>, vector<16x256xbf16>
    tpu.vector_store %arg6[%c0_14, %c0_15], %45 {strides = array<i32>} : memref<145x512xbf16, #tpu.memory_space<vmem>>, vector<16x256xbf16>,
    %47 = vector.extract_strided_slice %38 {offsets = [0, 1], sizes = [16, 256], strides = [1, 1]} : vector<16x290xbf16> to vector<16x256xbf16>
    %c16 = arith.constant 16 : index
    %c0_16 = arith.constant 0 : index
    %48 = vector.load %arg6[%c16, %c0_16] : memref<145x512xbf16, #tpu.memory_space<vmem>>, vector<16x256xbf16>
    tpu.vector_store %arg6[%c16, %c0_16], %47 {strides = array<i32>} : memref<145x512xbf16, #tpu.memory_space<vmem>>, vector<16x256xbf16>,
    %49 = vector.extract_strided_slice %38 {offsets = [0, 2], sizes = [16, 256], strides = [1, 1]} : vector<16x290xbf16> to vector<16x256xbf16>
    %50 = arith.extf %49 : vector<16x256xbf16> to vector<16x256xf32>
    %cst_17 = arith.constant 0.000000e+00 : f32
    %51 = vector.shape_cast %36 : vector<1x256xi1> to vector<1x256xi1>
    %52 = vector.broadcast %51 : vector<1x256xi1> to vector<16x256xi1>
    %53 = vector.broadcast %cst_17 : f32 to vector<16x256xf32>
    %54 = arith.select %52, %50, %53 : vector<16x256xi1>, vector<16x256xf32>
    %55 = arith.truncf %54 : vector<16x256xf32> to vector<16x256xbf16>
    %c32 = arith.constant 32 : index
    %c0_18 = arith.constant 0 : index
    %56 = vector.load %arg6[%c32, %c0_18] : memref<145x512xbf16, #tpu.memory_space<vmem>>, vector<16x256xbf16>
    tpu.vector_store %arg6[%c32, %c0_18], %55 {strides = array<i32>} : memref<145x512xbf16, #tpu.memory_space<vmem>>, vector<16x256xbf16>,
    %57 = vector.extract_strided_slice %38 {offsets = [0, 16], sizes = [16, 256], strides = [1, 1]} : vector<16x290xbf16> to vector<16x256xbf16>
    %58 = arith.extf %57 : vector<16x256xbf16> to vector<16x256xf32>
    %cst_19 = arith.constant 0.000000e+00 : f32
    %59 = vector.shape_cast %27 : vector<1x256xi1> to vector<1x256xi1>
    %60 = vector.broadcast %59 : vector<1x256xi1> to vector<16x256xi1>
    %61 = vector.broadcast %cst_19 : f32 to vector<16x256xf32>
    %62 = arith.select %60, %58, %61 : vector<16x256xi1>, vector<16x256xf32>
    %63 = arith.truncf %62 : vector<16x256xf32> to vector<16x256xbf16>
    %c48 = arith.constant 48 : index
    %c0_20 = arith.constant 0 : index
    %64 = vector.load %arg6[%c48, %c0_20] : memref<145x512xbf16, #tpu.memory_space<vmem>>, vector<16x256xbf16>
    tpu.vector_store %arg6[%c48, %c0_20], %63 {strides = array<i32>} : memref<145x512xbf16, #tpu.memory_space<vmem>>, vector<16x256xbf16>,
    %65 = vector.extract_strided_slice %38 {offsets = [0, 17], sizes = [16, 256], strides = [1, 1]} : vector<16x290xbf16> to vector<16x256xbf16>
    %c64 = arith.constant 64 : index
    %c0_21 = arith.constant 0 : index
    %66 = vector.load %arg6[%c64, %c0_21] : memref<145x512xbf16, #tpu.memory_space<vmem>>, vector<16x256xbf16>
    tpu.vector_store %arg6[%c64, %c0_21], %65 {strides = array<i32>} : memref<145x512xbf16, #tpu.memory_space<vmem>>, vector<16x256xbf16>,
    %67 = vector.extract_strided_slice %38 {offsets = [0, 18], sizes = [16, 256], strides = [1, 1]} : vector<16x290xbf16> to vector<16x256xbf16>
    %68 = arith.extf %67 : vector<16x256xbf16> to vector<16x256xf32>
    %cst_22 = arith.constant 0.000000e+00 : f32
    %69 = vector.shape_cast %36 : vector<1x256xi1> to vector<1x256xi1>
    %70 = vector.broadcast %69 : vector<1x256xi1> to vector<16x256xi1>
    %71 = vector.broadcast %cst_22 : f32 to vector<16x256xf32>
    %72 = arith.select %70, %68, %71 : vector<16x256xi1>, vector<16x256xf32>
    %73 = arith.truncf %72 : vector<16x256xf32> to vector<16x256xbf16>
    %c80 = arith.constant 80 : index
    %c0_23 = arith.constant 0 : index
    %74 = vector.load %arg6[%c80, %c0_23] : memref<145x512xbf16, #tpu.memory_space<vmem>>, vector<16x256xbf16>
    tpu.vector_store %arg6[%c80, %c0_23], %73 {strides = array<i32>} : memref<145x512xbf16, #tpu.memory_space<vmem>>, vector<16x256xbf16>,
    %75 = vector.extract_strided_slice %38 {offsets = [0, 32], sizes = [16, 256], strides = [1, 1]} : vector<16x290xbf16> to vector<16x256xbf16>
    %76 = arith.extf %75 : vector<16x256xbf16> to vector<16x256xf32>
    %cst_24 = arith.constant 0.000000e+00 : f32
    %77 = vector.shape_cast %27 : vector<1x256xi1> to vector<1x256xi1>
    %78 = vector.broadcast %77 : vector<1x256xi1> to vector<16x256xi1>
    %79 = vector.broadcast %cst_24 : f32 to vector<16x256xf32>
    %80 = arith.select %78, %76, %79 : vector<16x256xi1>, vector<16x256xf32>
    %81 = arith.truncf %80 : vector<16x256xf32> to vector<16x256xbf16>
    %c96 = arith.constant 96 : index
    %c0_25 = arith.constant 0 : index
    %82 = vector.load %arg6[%c96, %c0_25] : memref<145x512xbf16, #tpu.memory_space<vmem>>, vector<16x256xbf16>
    tpu.vector_store %arg6[%c96, %c0_25], %81 {strides = array<i32>} : memref<145x512xbf16, #tpu.memory_space<vmem>>, vector<16x256xbf16>,
    %83 = vector.extract_strided_slice %38 {offsets = [0, 33], sizes = [16, 256], strides = [1, 1]} : vector<16x290xbf16> to vector<16x256xbf16>
    %c112 = arith.constant 112 : index
    %c0_26 = arith.constant 0 : index
    %84 = vector.load %arg6[%c112, %c0_26] : memref<145x512xbf16, #tpu.memory_space<vmem>>, vector<16x256xbf16>
    tpu.vector_store %arg6[%c112, %c0_26], %83 {strides = array<i32>} : memref<145x512xbf16, #tpu.memory_space<vmem>>, vector<16x256xbf16>,
    %85 = vector.extract_strided_slice %38 {offsets = [0, 34], sizes = [16, 256], strides = [1, 1]} : vector<16x290xbf16> to vector<16x256xbf16>
    %86 = arith.extf %85 : vector<16x256xbf16> to vector<16x256xf32>
    %cst_27 = arith.constant 0.000000e+00 : f32
    %87 = vector.shape_cast %36 : vector<1x256xi1> to vector<1x256xi1>
    %88 = vector.broadcast %87 : vector<1x256xi1> to vector<16x256xi1>
    %89 = vector.broadcast %cst_27 : f32 to vector<16x256xf32>
    %90 = arith.select %88, %86, %89 : vector<16x256xi1>, vector<16x256xf32>
    %91 = arith.truncf %90 : vector<16x256xf32> to vector<16x256xbf16>
    %c128 = arith.constant 128 : index
    %c0_28 = arith.constant 0 : index
    %92 = vector.load %arg6[%c128, %c0_28] : memref<145x512xbf16, #tpu.memory_space<vmem>>, vector<16x256xbf16>
    tpu.vector_store %arg6[%c128, %c0_28], %91 {strides = array<i32>} : memref<145x512xbf16, #tpu.memory_space<vmem>>, vector<16x256xbf16>,
    %c1 = arith.constant 1 : index
    %c0_29 = arith.constant 0 : index
    %c0_30 = arith.constant 0 : index
    %93 = vector.load %arg1[%c1, %c0_29, %c0_30] : memref<2x16x290xbf16, #tpu.memory_space<vmem>>, vector<1x16x290xbf16>
    %94 = vector.shape_cast %93 : vector<1x16x290xbf16> to vector<16x290xbf16>
    %95 = vector.extract_strided_slice %94 {offsets = [0, 0], sizes = [16, 256], strides = [1, 1]} : vector<16x290xbf16> to vector<16x256xbf16>
    %96 = arith.extf %95 : vector<16x256xbf16> to vector<16x256xf32>
    %cst_31 = arith.constant 0.000000e+00 : f32
    %97 = vector.shape_cast %27 : vector<1x256xi1> to vector<1x256xi1>
    %98 = vector.broadcast %97 : vector<1x256xi1> to vector<16x256xi1>
    %99 = vector.broadcast %cst_31 : f32 to vector<16x256xf32>
    %100 = arith.select %98, %96, %99 : vector<16x256xi1>, vector<16x256xf32>
    %101 = arith.truncf %100 : vector<16x256xf32> to vector<16x256xbf16>
    %c0_32 = arith.constant 0 : index
    %c256 = arith.constant 256 : index
    %102 = vector.load %arg6[%c0_32, %c256] : memref<145x512xbf16, #tpu.memory_space<vmem>>, vector<16x256xbf16>
    tpu.vector_store %arg6[%c0_32, %c256], %101 {strides = array<i32>} : memref<145x512xbf16, #tpu.memory_space<vmem>>, vector<16x256xbf16>,
    %103 = vector.extract_strided_slice %94 {offsets = [0, 1], sizes = [16, 256], strides = [1, 1]} : vector<16x290xbf16> to vector<16x256xbf16>
    %c16_33 = arith.constant 16 : index
    %c256_34 = arith.constant 256 : index
    %104 = vector.load %arg6[%c16_33, %c256_34] : memref<145x512xbf16, #tpu.memory_space<vmem>>, vector<16x256xbf16>
    tpu.vector_store %arg6[%c16_33, %c256_34], %103 {strides = array<i32>} : memref<145x512xbf16, #tpu.memory_space<vmem>>, vector<16x256xbf16>,
    %105 = vector.extract_strided_slice %94 {offsets = [0, 2], sizes = [16, 256], strides = [1, 1]} : vector<16x290xbf16> to vector<16x256xbf16>
    %106 = arith.extf %105 : vector<16x256xbf16> to vector<16x256xf32>
    %cst_35 = arith.constant 0.000000e+00 : f32
    %107 = vector.shape_cast %36 : vector<1x256xi1> to vector<1x256xi1>
    %108 = vector.broadcast %107 : vector<1x256xi1> to vector<16x256xi1>
    %109 = vector.broadcast %cst_35 : f32 to vector<16x256xf32>
    %110 = arith.select %108, %106, %109 : vector<16x256xi1>, vector<16x256xf32>
    %111 = arith.truncf %110 : vector<16x256xf32> to vector<16x256xbf16>
    %c32_36 = arith.constant 32 : index
    %c256_37 = arith.constant 256 : index
    %112 = vector.load %arg6[%c32_36, %c256_37] : memref<145x512xbf16, #tpu.memory_space<vmem>>, vector<16x256xbf16>
    tpu.vector_store %arg6[%c32_36, %c256_37], %111 {strides = array<i32>} : memref<145x512xbf16, #tpu.memory_space<vmem>>, vector<16x256xbf16>,
    %113 = vector.extract_strided_slice %94 {offsets = [0, 16], sizes = [16, 256], strides = [1, 1]} : vector<16x290xbf16> to vector<16x256xbf16>
    %114 = arith.extf %113 : vector<16x256xbf16> to vector<16x256xf32>
    %cst_38 = arith.constant 0.000000e+00 : f32
    %115 = vector.shape_cast %27 : vector<1x256xi1> to vector<1x256xi1>
    %116 = vector.broadcast %115 : vector<1x256xi1> to vector<16x256xi1>
    %117 = vector.broadcast %cst_38 : f32 to vector<16x256xf32>
    %118 = arith.select %116, %114, %117 : vector<16x256xi1>, vector<16x256xf32>
    %119 = arith.truncf %118 : vector<16x256xf32> to vector<16x256xbf16>
    %c48_39 = arith.constant 48 : index
    %c256_40 = arith.constant 256 : index
    %120 = vector.load %arg6[%c48_39, %c256_40] : memref<145x512xbf16, #tpu.memory_space<vmem>>, vector<16x256xbf16>
    tpu.vector_store %arg6[%c48_39, %c256_40], %119 {strides = array<i32>} : memref<145x512xbf16, #tpu.memory_space<vmem>>, vector<16x256xbf16>,
    %121 = vector.extract_strided_slice %94 {offsets = [0, 17], sizes = [16, 256], strides = [1, 1]} : vector<16x290xbf16> to vector<16x256xbf16>
    %c64_41 = arith.constant 64 : index
    %c256_42 = arith.constant 256 : index
    %122 = vector.load %arg6[%c64_41, %c256_42] : memref<145x512xbf16, #tpu.memory_space<vmem>>, vector<16x256xbf16>
    tpu.vector_store %arg6[%c64_41, %c256_42], %121 {strides = array<i32>} : memref<145x512xbf16, #tpu.memory_space<vmem>>, vector<16x256xbf16>,
    %123 = vector.extract_strided_slice %94 {offsets = [0, 18], sizes = [16, 256], strides = [1, 1]} : vector<16x290xbf16> to vector<16x256xbf16>
    %124 = arith.extf %123 : vector<16x256xbf16> to vector<16x256xf32>
    %cst_43 = arith.constant 0.000000e+00 : f32
    %125 = vector.shape_cast %36 : vector<1x256xi1> to vector<1x256xi1>
    %126 = vector.broadcast %125 : vector<1x256xi1> to vector<16x256xi1>
    %127 = vector.broadcast %cst_43 : f32 to vector<16x256xf32>
    %128 = arith.select %126, %124, %127 : vector<16x256xi1>, vector<16x256xf32>
    %129 = arith.truncf %128 : vector<16x256xf32> to vector<16x256xbf16>
    %c80_44 = arith.constant 80 : index
    %c256_45 = arith.constant 256 : index
    %130 = vector.load %arg6[%c80_44, %c256_45] : memref<145x512xbf16, #tpu.memory_space<vmem>>, vector<16x256xbf16>
    tpu.vector_store %arg6[%c80_44, %c256_45], %129 {strides = array<i32>} : memref<145x512xbf16, #tpu.memory_space<vmem>>, vector<16x256xbf16>,
    %131 = vector.extract_strided_slice %94 {offsets = [0, 32], sizes = [16, 256], strides = [1, 1]} : vector<16x290xbf16> to vector<16x256xbf16>
    %132 = arith.extf %131 : vector<16x256xbf16> to vector<16x256xf32>
    %cst_46 = arith.constant 0.000000e+00 : f32
    %133 = vector.shape_cast %27 : vector<1x256xi1> to vector<1x256xi1>
    %134 = vector.broadcast %133 : vector<1x256xi1> to vector<16x256xi1>
    %135 = vector.broadcast %cst_46 : f32 to vector<16x256xf32>
    %136 = arith.select %134, %132, %135 : vector<16x256xi1>, vector<16x256xf32>
    %137 = arith.truncf %136 : vector<16x256xf32> to vector<16x256xbf16>
    %c96_47 = arith.constant 96 : index
    %c256_48 = arith.constant 256 : index
    %138 = vector.load %arg6[%c96_47, %c256_48] : memref<145x512xbf16, #tpu.memory_space<vmem>>, vector<16x256xbf16>
    tpu.vector_store %arg6[%c96_47, %c256_48], %137 {strides = array<i32>} : memref<145x512xbf16, #tpu.memory_space<vmem>>, vector<16x256xbf16>,
    %139 = vector.extract_strided_slice %94 {offsets = [0, 33], sizes = [16, 256], strides = [1, 1]} : vector<16x290xbf16> to vector<16x256xbf16>
    %c112_49 = arith.constant 112 : index
    %c256_50 = arith.constant 256 : index
    %140 = vector.load %arg6[%c112_49, %c256_50] : memref<145x512xbf16, #tpu.memory_space<vmem>>, vector<16x256xbf16>
    tpu.vector_store %arg6[%c112_49, %c256_50], %139 {strides = array<i32>} : memref<145x512xbf16, #tpu.memory_space<vmem>>, vector<16x256xbf16>,
    %141 = vector.extract_strided_slice %94 {offsets = [0, 34], sizes = [16, 256], strides = [1, 1]} : vector<16x290xbf16> to vector<16x256xbf16>
    %142 = arith.extf %141 : vector<16x256xbf16> to vector<16x256xf32>
    %cst_51 = arith.constant 0.000000e+00 : f32
    %143 = vector.shape_cast %36 : vector<1x256xi1> to vector<1x256xi1>
    %144 = vector.broadcast %143 : vector<1x256xi1> to vector<16x256xi1>
    %145 = vector.broadcast %cst_51 : f32 to vector<16x256xf32>
    %146 = arith.select %144, %142, %145 : vector<16x256xi1>, vector<16x256xf32>
    %147 = arith.truncf %146 : vector<16x256xf32> to vector<16x256xbf16>
    %c128_52 = arith.constant 128 : index
    %c256_53 = arith.constant 256 : index
    %148 = vector.load %arg6[%c128_52, %c256_53] : memref<145x512xbf16, #tpu.memory_space<vmem>>, vector<16x256xbf16>
    tpu.vector_store %arg6[%c128_52, %c256_53], %147 {strides = array<i32>} : memref<145x512xbf16, #tpu.memory_space<vmem>>, vector<16x256xbf16>,
    %c0_54 = arith.constant 0 : index
    %c0_55 = arith.constant 0 : index
    %149 = vector.load %arg3[%c0_54, %c0_55] : memref<32x145xbf16, #tpu.memory_space<vmem>>, vector<32x145xbf16>
    %c0_56 = arith.constant 0 : index
    %c0_57 = arith.constant 0 : index
    %150 = vector.load %arg6[%c0_56, %c0_57] : memref<145x512xbf16, #tpu.memory_space<vmem>>, vector<145x512xbf16>
    %cst_58 = arith.constant dense<0.000000e+00> : vector<32x512xf32>
    %151 = tpu.matmul %149, %150, %cst_58 {dimension_numbers = #tpu.dot_dimension_numbers<[1], [0], [0], [1], [0, 0, 1, 1], [], []>} : vector<32x145xbf16>, vector<145x512xbf16>, vector<32x512xf32> -> vector<32x512xf32>
    %152 = vector.extract_strided_slice %151 {offsets = [0, 0], sizes = [8, 512], strides = [1, 1]} : vector<32x512xf32> to vector<8x512xf32>
    %cst_59 = arith.constant 5.000000e-01 : f32
    %153 = vector.broadcast %cst_59 : f32 to vector<8x512xf32>
    %154 = arith.mulf %153, %152 : vector<8x512xf32>
    %155 = math.tanh %154 : vector<8x512xf32>
    %cst_60 = arith.constant 5.000000e-01 : f32
    %156 = vector.broadcast %cst_60 : f32 to vector<8x512xf32>
    %157 = arith.mulf %156, %155 : vector<8x512xf32>
    %cst_61 = arith.constant 5.000000e-01 : f32
    %158 = vector.broadcast %cst_61 : f32 to vector<8x512xf32>
    %159 = arith.addf %157, %158 : vector<8x512xf32>
    %160 = vector.extract_strided_slice %151 {offsets = [8, 0], sizes = [8, 512], strides = [1, 1]} : vector<32x512xf32> to vector<8x512xf32>
    %cst_62 = arith.constant 5.000000e-01 : f32
    %161 = vector.broadcast %cst_62 : f32 to vector<8x512xf32>
    %162 = arith.mulf %161, %160 : vector<8x512xf32>
    %163 = math.tanh %162 : vector<8x512xf32>
    %cst_63 = arith.constant 5.000000e-01 : f32
    %164 = vector.broadcast %cst_63 : f32 to vector<8x512xf32>
    %165 = arith.mulf %164, %163 : vector<8x512xf32>
    %cst_64 = arith.constant 5.000000e-01 : f32
    %166 = vector.broadcast %cst_64 : f32 to vector<8x512xf32>
    %167 = arith.addf %165, %166 : vector<8x512xf32>
    %168 = vector.extract_strided_slice %151 {offsets = [16, 0], sizes = [8, 512], strides = [1, 1]} : vector<32x512xf32> to vector<8x512xf32>
    %169 = math.tanh %168 : vector<8x512xf32>
    %170 = vector.extract_strided_slice %151 {offsets = [24, 0], sizes = [8, 512], strides = [1, 1]} : vector<32x512xf32> to vector<8x512xf32>
    %cst_65 = arith.constant 5.000000e-01 : f32
    %171 = vector.broadcast %cst_65 : f32 to vector<8x512xf32>
    %172 = arith.mulf %171, %170 : vector<8x512xf32>
    %173 = math.tanh %172 : vector<8x512xf32>
    %cst_66 = arith.constant 5.000000e-01 : f32
    %174 = vector.broadcast %cst_66 : f32 to vector<8x512xf32>
    %175 = arith.mulf %174, %173 : vector<8x512xf32>
    %cst_67 = arith.constant 5.000000e-01 : f32
    %176 = vector.broadcast %cst_67 : f32 to vector<8x512xf32>
    %177 = arith.addf %175, %176 : vector<8x512xf32>
    %c0_68 = arith.constant 0 : index
    %c0_69 = arith.constant 0 : index
    %c0_70 = arith.constant 0 : index
    %178 = vector.load %arg2[%c0_68, %c0_69, %c0_70] : memref<2x8x256xf32, #tpu.memory_space<vmem>>, vector<1x8x256xf32>
    %179 = vector.shape_cast %178 : vector<1x8x256xf32> to vector<8x256xf32>
    %c1_71 = arith.constant 1 : index
    %c0_72 = arith.constant 0 : index
    %c0_73 = arith.constant 0 : index
    %180 = vector.load %arg2[%c1_71, %c0_72, %c0_73] : memref<2x8x256xf32, #tpu.memory_space<vmem>>, vector<1x8x256xf32>
    %181 = vector.shape_cast %180 : vector<1x8x256xf32> to vector<8x256xf32>
    %182 = tpu.concatenate %179, %181 in 1 : vector<8x256xf32>, vector<8x256xf32> -> vector<8x512xf32>
    %183 = arith.mulf %167, %182 : vector<8x512xf32>
    %184 = arith.mulf %159, %169 : vector<8x512xf32>
    %185 = arith.addf %183, %184 : vector<8x512xf32>
    %186 = math.tanh %185 : vector<8x512xf32>
    %187 = arith.mulf %177, %186 : vector<8x512xf32>
    %188 = vector.extract_strided_slice %187 {offsets = [0, 0], sizes = [8, 256], strides = [1, 1]} : vector<8x512xf32> to vector<8x256xf32>
    %c0_74 = arith.constant 0 : index
    %c0_75 = arith.constant 0 : index
    %c0_76 = arith.constant 0 : index
    %189 = vector.load %arg4[%c0_74, %c0_75, %c0_76] : memref<2x8x256xf32, #tpu.memory_space<vmem>>, vector<1x8x256xf32>
    %190 = vector.shape_cast %189 : vector<1x8x256xf32> to vector<8x256xf32>
    %191 = vector.shape_cast %188 : vector<8x256xf32> to vector<1x8x256xf32>
    tpu.vector_store %arg4[%c0_74, %c0_75, %c0_76], %191 {strides = array<i32>} : memref<2x8x256xf32, #tpu.memory_space<vmem>>, vector<1x8x256xf32>,
    %192 = vector.extract_strided_slice %185 {offsets = [0, 0], sizes = [8, 256], strides = [1, 1]} : vector<8x512xf32> to vector<8x256xf32>
    %c0_77 = arith.constant 0 : index
    %c0_78 = arith.constant 0 : index
    %c0_79 = arith.constant 0 : index
    %193 = vector.load %arg5[%c0_77, %c0_78, %c0_79] : memref<2x8x256xf32, #tpu.memory_space<vmem>>, vector<1x8x256xf32>
    %194 = vector.shape_cast %193 : vector<1x8x256xf32> to vector<8x256xf32>
    %195 = vector.shape_cast %192 : vector<8x256xf32> to vector<1x8x256xf32>
    tpu.vector_store %arg5[%c0_77, %c0_78, %c0_79], %195 {strides = array<i32>} : memref<2x8x256xf32, #tpu.memory_space<vmem>>, vector<1x8x256xf32>,
    %196 = vector.extract_strided_slice %187 {offsets = [0, 256], sizes = [8, 256], strides = [1, 1]} : vector<8x512xf32> to vector<8x256xf32>
    %c1_80 = arith.constant 1 : index
    %c0_81 = arith.constant 0 : index
    %c0_82 = arith.constant 0 : index
    %197 = vector.load %arg4[%c1_80, %c0_81, %c0_82] : memref<2x8x256xf32, #tpu.memory_space<vmem>>, vector<1x8x256xf32>
    %198 = vector.shape_cast %197 : vector<1x8x256xf32> to vector<8x256xf32>
    %199 = vector.shape_cast %196 : vector<8x256xf32> to vector<1x8x256xf32>
    tpu.vector_store %arg4[%c1_80, %c0_81, %c0_82], %199 {strides = array<i32>} : memref<2x8x256xf32, #tpu.memory_space<vmem>>, vector<1x8x256xf32>,
    %200 = vector.extract_strided_slice %185 {offsets = [0, 256], sizes = [8, 256], strides = [1, 1]} : vector<8x512xf32> to vector<8x256xf32>
    %c1_83 = arith.constant 1 : index
    %c0_84 = arith.constant 0 : index
    %c0_85 = arith.constant 0 : index
    %201 = vector.load %arg5[%c1_83, %c0_84, %c0_85] : memref<2x8x256xf32, #tpu.memory_space<vmem>>, vector<1x8x256xf32>
    %202 = vector.shape_cast %201 : vector<1x8x256xf32> to vector<8x256xf32>
    %203 = vector.shape_cast %200 : vector<8x256xf32> to vector<1x8x256xf32>
    tpu.vector_store %arg5[%c1_83, %c0_84, %c0_85], %203 {strides = array<i32>} : memref<2x8x256xf32, #tpu.memory_space<vmem>>, vector<1x8x256xf32>,
    return
  }
  func.func @transform_0(%arg0: i32) -> (i32, i32, i32) {
    %c0_i32 = arith.constant 0 : i32
    %c0_i32_0 = arith.constant 0 : i32
    %c0_i32_1 = arith.constant 0 : i32
    return %arg0, %c0_i32, %c0_i32_0 : i32, i32, i32
  }
  func.func @transform_1(%arg0: i32) -> (i32, i32, i32) {
    %c0_i32 = arith.constant 0 : i32
    %c0_i32_0 = arith.constant 0 : i32
    %c0_i32_1 = arith.constant 0 : i32
    return %arg0, %c0_i32, %c0_i32_0 : i32, i32, i32
  }
  func.func @transform_2(%arg0: i32) -> (i32, i32) {
    %c0_i32 = arith.constant 0 : i32
    %c0_i32_0 = arith.constant 0 : i32
    %c0_i32_1 = arith.constant 0 : i32
    return %c0_i32, %c0_i32_0 : i32, i32
  }
  func.func @transform_3(%arg0: i32) -> (i32, i32, i32) {
    %c0_i32 = arith.constant 0 : i32
    %c0_i32_0 = arith.constant 0 : i32
    %c0_i32_1 = arith.constant 0 : i32
    return %arg0, %c0_i32, %c0_i32_0 : i32, i32, i32
  }
  func.func @transform_4(%arg0: i32) -> (i32, i32, i32) {
    %c0_i32 = arith.constant 0 : i32
    %c0_i32_0 = arith.constant 0 : i32
    %c0_i32_1 = arith.constant 0 : i32
    return %arg0, %c0_i32, %c0_i32_0 : i32, i32, i32
  }
}

</mosaic_0001>

<bundles_post_ra>
// kernel: conv_lstm_cell.1
= control target key start
LH: loop header
LB: loop body
LE: loop exit
PB: predicated region body
PF: predicated region fallthrough
CT: control target
= control target key end

     0   :  { %v31_v0 = vlaneseq  ;;  %s1556_s19 = smov 127   ;;  %s1558_s6 = smov 112   ;;  %vm18_vm4 = vcmask 1040384   ;;  %vm19_vm5 = vsmask.f32 256  ;;  %vm21_vm6 = vcmask 1044484   ;;  %s1929_s0 = inlined_call_operand.vmem [shape: bf16[2,16,290], index: 0, kind: input, shape index: {}]   ;;  %s1930_s2 = inlined_call_operand.vmem [shape: bf16[32,145], index: 2, kind: input, shape index: {}]   ;;  %s1931_s1 = inlined_call_operand.vmem [shape: f32[2,8,256], index: 1, kind: input, shape index: {}]   ;;  %s1932_s4 = inlined_call_operand.vmem [shape: f32[2,8,256], index: 4, kind: output, shape index: {1}]   ;;  %s1933_s3 = inlined_call_operand.vmem [shape: f32[2,8,256], index: 3, kind: output, shape index: {0}]  }
   0x1   :  { %v1593_v1 = vld [vmem:[%s1929_s0 + $0xc] sm:$0xff]  ;;  %v1598_v2 = vld [vmem:[%s1929_s0] sm:$0xff]  ;;  %v1609_v4 = vld [vmem:[%s1929_s0 + $0x14] sm:$0xf]  ;;  %s1559_s7 = smov 111   ;;  %s1560_s8 = smov 110  }
   0x2   :  { %v1600_v3 = vand.u32 127, %v31_v0  ;;  %112 = vrot.lane.b32.xlu1 %v1593_v1, %s1556_s19  ;;  %108 = vrot.lane.b32.xlu0 %v1598_v2, %s1556_s19  ;;  %v1614_v5 = vld [vmem:[%s1929_s0 + $0x8] sm:$0xf]  ;;  %v80_v10 = vunpack.c.l.bf16 %v1593_v1  ;;  %v81_v11 = vunpack.c.h.bf16 %v1593_v1  ;;  %v1632_v12 = vld [vmem:[%s1929_s0 + $0x18] sm:$0xff]  ;;  %v78_v14 = vunpack.c.l.bf16 %v1598_v2  ;;  %s1561_s9 = smov 96   ;;  %s1562_s10 = smov 95   ;;  %vm20_vm8 = vmand %vm18_vm4, %vm19_vm5 }
   0x3   :  { %v1637_v13 = vld [vmem:[%s1929_s0 + $0x24] sm:$0xff]  ;;  %v79_v15 = vunpack.c.h.bf16 %v1598_v2  ;;  %v1644_v16 = vld [vmem:[%s1929_s0 + $0x20] sm:$0xf]  ;;  %v384_v17 = vunpack.c.l.bf16 %v1632_v12  ;;  %v385_v20 = vunpack.c.h.bf16 %v1632_v12  ;;  %v130_v22 = vunpack.c.l.bf16 %v1614_v5  ;;  %v1660_v23 = vld [vmem:[%s1929_s0 + $0x2c] sm:$0xf]  ;;  %s1557_s0 = smov 126  }
   0x4   :  { %v1617_v6 = vadd.s32 128, %v1600_v3  ;;  %v38_v7 = vand.u32 15, %v1600_v3  ;;  %v386_v18 = vunpack.c.l.bf16 %v1637_v13  ;;  %v387_v21 = vunpack.c.h.bf16 %v1637_v13  ;;  %v25_v39 = vld [vmem:[#allocation2 + $0x120] sm:$0x11]  ;;  %v28_v41 = vld [vmem:[#allocation2 + $0x128] sm:$0x11] }
   0x5   :  { %v131_v24 = vunpack.c.l.bf16 %v1609_v4  ;;  %v1667_v25 = vpack.i.bf16 %v80_v10, %v130_v22  ;;  %v1669_v26 = vpack.i.bf16 %v79_v15, %v78_v14  ;;  %v430_v27 = vunpack.c.l.bf16 %v1644_v16  ;;  %s1563_s11 = smov 94   ;;  %v1410_v43 = vld [vmem:[%s1930_s2 + $0x4] ss:$8 sps:$4 sm:$0xff]  }
   0x6   :  { %v45_v8 = vand.u32 15, %v1617_v6  ;;  %v58_v9 = vadd.s32 4294967295, %v38_v7  ;;  %114 = vrot.lane.b32.xlu1 %v1609_v4, %s1556_s19  ;;  %110 = vrot.lane.b32.xlu0 %v1614_v5, %s1556_s19  ;;  %v431_v28 = vunpack.c.l.bf16 %v1660_v23  ;;  %v1673_v29 = vpack.i.bf16 %v385_v20, %v384_v17 }
   0x7   :  { %v1675_v30 = vpack.i.bf16 %v131_v24, %v81_v11  ;;  %v1679_v32 = vpack.i.bf16 %v386_v18, %v430_v27  ;;  %v1552_v34 = vcombine.high %v1598_v2, %v1593_v1  ;;  %v1553_v36 = vcombine.low %v1598_v2, %v1593_v1 }
   0x8   :  { %v59_v19 = vadd.s32 4294967295, %v45_v8  ;;  %vm60_vm0 = vcmp.ge.s32.totalorder %v58_v9, 0  ;;  %v1677_v31 = vpack.i.bf16 %v431_v28, %v387_v21  ;;  %v1554_v37 = vcombine.high %v1632_v12, %v1637_v13 }
   0x9   :  { %vm1695_vm3 = vmpackc.low %vm60_vm0, %vm60_vm0  ;;  %v1555_v38 = vcombine.low %v1632_v12, %v1637_v13  ;;  %vm22_vm7 = vsmask.f32 4352  ;;  %vm918_vm11 = vcmask 138240   ;;  %vm120_vm12 = vcmask 1043456  }
   0xa   :  { %vm61_vm1 = vcmp.ge.s32.totalorder %v59_v19, 0  ;;  %412 = vrot.lane.b32.xlu1 %v1644_v16, %s1556_s19  ;;  %410 = vrot.lane.b32.xlu0 %v1632_v12, %s1556_s19  ;;  %vm23_vm9 = vmand %vm21_vm6, %vm22_vm7  ;;  %vm122_vm13 = vcmask 1039360   ;;  %v67_v9 = vadd.s32 1, %v45_v8  ;;  %vm154_vm15 = vcmask 1031168  }
   0xb   :  { %vm1685_vm2 = vmpackc.low %vm61_vm1, %vm61_vm1  ;;  %1213 = vmatprep.mubr.msk.bf16.mxu0 %vm918_vm11, %v1410_v43  ;;  %1215 = vmatprep.mubr.msk.bf16.mxu1 %vm918_vm11, %v1410_v43  ;;  %vm193_vm1 = vcmask 916480   ;;  %vm233_vm7 = vcmask 908288   ;;  %v1415_v43 = vld [vmem:[%s1930_s2 + $0x10] ss:$8 sps:$4 sm:$0xff]  }
   0xc   :  { %1460 = vmatprep.subr.msk.bf16.mxu0 %vm1685_vm2, %v1552_v34  ;;  %1468 = vmatprep.subr.msk.bf16.mxu1 %vm1685_vm2, %v1554_v37  ;;  %vm24_vm10 = vmor %vm23_vm9, %vm20_vm8  ;;  %vm71_vm0 = vcmp.lt.s32.totalorder %v67_v9, 16  ;;  %vm253_vm8 = vcmask 900096   ;;  %vm292_vm9 = vcmask 785408  }
   0xd   :  { %1465 = vmatpush1.bf16.msk.msra.mxu0 %vm1695_vm3, %v1553_v36  ;;  %1471 = vmatpush1.bf16.msk.msra.mxu1 %vm1695_vm3, %v1555_v38  ;;  %v26_v40 = vsel %vm24_vm10, 1065369472, %v25_v39  ;;  %v29_v42 = vsel %vm24_vm10, 1065369472, %v28_v41  ;;  %vm1783_vm5 = vmpackc.low %vm71_vm0, %vm71_vm0  ;;  %vm332_vm10 = vcmask 777216  }
   0xe   :  { %416 = vrot.lane.b32.xlu1 %v1660_v23, %s1556_s19  ;;  %414 = vrot.lane.b32.xlu0 %v1637_v13, %s1556_s19  ;;  %27 = vst [vmem:[#allocation2 + $0x120] sm:$0x11] %v26_v40  ;;  %30 = vst [vmem:[#allocation2 + $0x128] sm:$0x11] %v29_v42 }
  0x12   :  { %1262 = vrot.lane.b32.xlu1 %v1667_v25, %s1557_s0  ;;  %1257 = vrot.lane.b32.xlu0 %v1669_v26, %s1557_s0 }
  0x16   :  { %1272 = vrot.lane.b32.xlu1 %v1673_v29, %s1557_s0  ;;  %1267 = vrot.lane.b32.xlu0 %v1675_v30, %s1557_s0 }
  0x1a   :  { %1282 = vrot.lane.b32.xlu1 %v1677_v31, %s1557_s0  ;;  %1277 = vrot.lane.b32.xlu0 %v1679_v32, %s1557_s0 }
  0x1e   :  { %1292 = vrot.lane.b32.xlu1 %v1667_v25, %s1558_s6  ;;  %1287 = vrot.lane.b32.xlu0 %v1669_v26, %s1558_s6 }
  0x22   :  { %1302 = vrot.lane.b32.xlu1 %v1673_v29, %s1558_s6  ;;  %1297 = vrot.lane.b32.xlu0 %v1675_v30, %s1558_s6 }
  0x26   :  { %1312 = vrot.lane.b32.xlu1 %v1677_v31, %s1558_s6  ;;  %1307 = vrot.lane.b32.xlu0 %v1679_v32, %s1558_s6 }
  0x2a   :  { %222 = vrot.lane.b32.xlu1 %v1614_v5, %s1559_s7  ;;  %220 = vrot.lane.b32.xlu0 %v1598_v2, %s1559_s7 }
  0x2e   :  { %226 = vrot.lane.b32.xlu1 %v1609_v4, %s1559_s7  ;;  %224 = vrot.lane.b32.xlu0 %v1593_v1, %s1559_s7 }
  0x32   :  { %516 = vrot.lane.b32.xlu1 %v1644_v16, %s1559_s7  ;;  %514 = vrot.lane.b32.xlu0 %v1632_v12, %s1559_s7 }
  0x36   :  { %520 = vrot.lane.b32.xlu1 %v1660_v23, %s1559_s7  ;;  %518 = vrot.lane.b32.xlu0 %v1637_v13, %s1559_s7 }
  0x3a   :  { %1322 = vrot.lane.b32.xlu1 %v1667_v25, %s1560_s8  ;;  %1317 = vrot.lane.b32.xlu0 %v1669_v26, %s1560_s8 }
  0x3e   :  { %1332 = vrot.lane.b32.xlu1 %v1673_v29, %s1560_s8  ;;  %1327 = vrot.lane.b32.xlu0 %v1675_v30, %s1560_s8 }
  0x42   :  { %1342 = vrot.lane.b32.xlu1 %v1677_v31, %s1560_s8  ;;  %1337 = vrot.lane.b32.xlu0 %v1679_v32, %s1560_s8 }
  0x46   :  { %1352 = vrot.lane.b32.xlu1 %v1667_v25, %s1561_s9  ;;  %1347 = vrot.lane.b32.xlu0 %v1669_v26, %s1561_s9 }
  0x4a   :  { %1362 = vrot.lane.b32.xlu1 %v1673_v29, %s1561_s9  ;;  %1357 = vrot.lane.b32.xlu0 %v1675_v30, %s1561_s9 }
  0x4e   :  { %1372 = vrot.lane.b32.xlu1 %v1677_v31, %s1561_s9  ;;  %1367 = vrot.lane.b32.xlu0 %v1679_v32, %s1561_s9 }
  0x52   :  { %321 = vrot.lane.b32.xlu1 %v1614_v5, %s1562_s10  ;;  %319 = vrot.lane.b32.xlu0 %v1598_v2, %s1562_s10  ;;  %v66_v2 = vadd.s32 1, %v38_v7 }
  0x54   :  { %vm70_vm14 = vcmp.lt.s32.totalorder %v66_v2, 16 }
  0x55   :  { %vm1793_vm6 = vmpackc.low %vm70_vm14, %vm70_vm14 }
  0x56   :  { %325 = vrot.lane.b32.xlu1 %v1609_v4, %s1562_s10  ;;  %323 = vrot.lane.b32.xlu0 %v1593_v1, %s1562_s10 }
  0x5a   :  { %612 = vrot.lane.b32.xlu1 %v1644_v16, %s1562_s10  ;;  %610 = vrot.lane.b32.xlu0 %v1632_v12, %s1562_s10 }
  0x5e   :  { %616 = vrot.lane.b32.xlu1 %v1660_v23, %s1562_s10  ;;  %614 = vrot.lane.b32.xlu0 %v1637_v13, %s1562_s10 }
  0x62   :  { %1382 = vrot.lane.b32.xlu1 %v1667_v25, %s1563_s11  ;;  %1377 = vrot.lane.b32.xlu0 %v1669_v26, %s1563_s11 }
  0x66   :  { %1392 = vrot.lane.b32.xlu1 %v1673_v29, %s1563_s11  ;;  %1387 = vrot.lane.b32.xlu0 %v1675_v30, %s1563_s11 }
  0x6a   :  { %1402 = vrot.lane.b32.xlu1 %v1677_v31, %s1563_s11  ;;  %1397 = vrot.lane.b32.xlu0 %v1679_v32, %s1563_s11 }
  0x74   :  { %v113_v44 = vpop.permute.xlu1 %112  ;;  %v109_v45 = vpop.permute.xlu0 %108 }
  0x75   :  { %v118_v48 = vrot.slane %v113_v44, 4  ;;  %v116_v49 = vrot.slane %v109_v45, 4 }
  0x78   :  { %v115_v46 = vpop.permute.xlu1 %114  ;;  %v111_v47 = vpop.permute.xlu0 %110 }
  0x79   :  { %v119_v50 = vrot.slane %v115_v46, 4  ;;  %v117_v51 = vrot.slane %v111_v47, 4 }
  0x7b   :  { %v124_v52 = vsel %vm120_vm12, %v118_v48, %v119_v50  ;;  %v121_v53 = vsel %vm120_vm12, %v116_v49, %v117_v51 }
  0x7c   :  { %v413_v54 = vpop.permute.xlu1 %412  ;;  %v123_v55 = vsel %vm122_vm13, %v109_v45, %v121_v53  ;;  %v125_v56 = vsel %vm122_vm13, %v113_v44, %v124_v52  ;;  %v411_v57 = vpop.permute.xlu0 %410 }
  0x7d   :  { %v419_v58 = vrot.slane %v413_v54, 4  ;;  %v418_v59 = vrot.slane %v411_v57, 4  ;;  %v1178_v60 = vcombine.high %v123_v55, %v125_v56  ;;  %v1177_v61 = vcombine.low %v123_v55, %v125_v56 }
  0x7f   :  { %v422_v62 = vsel %vm120_vm12, %v418_v59, %v419_v58  ;;  %942 = vmatprep.subr.bf16.mxu0 %v1178_v60 }
  0x80   :  { %v423_v63 = vsel %vm122_vm13, %v411_v57, %v422_v62  ;;  %v417_v0 = vpop.permute.xlu1 %416  ;;  %v415_v1 = vpop.permute.xlu0 %414  ;;  %943 = vmatpush1.bf16.msra.mxu0 %v1177_v61 }
  0x81   :  { %v421_v4 = vrot.slane %v417_v0, 4  ;;  %v420_v5 = vrot.slane %v415_v1, 4 }
  0x83   :  { %v424_v10 = vsel %vm120_vm12, %v420_v5, %v421_v4 }
  0x84   :  { %v425_v11 = vsel %vm122_vm13, %v415_v1, %v424_v10  ;;  %v1263_v12 = vpop.permute.xlu1 %1262  ;;  %v1258_v13 = vpop.permute.xlu0 %1257 }
  0x85   :  { %v1264_v14 = vunpack.i.l.bf16 %v1263_v12  ;;  %v1260_v15 = vunpack.i.h.bf16 %v1258_v13  ;;  %v1259_v16 = vunpack.i.l.bf16 %v1258_v13  ;;  %v1180_v3 = vcombine.high %v423_v63, %v425_v11 }
  0x86   :  { %v1179_v7 = vcombine.low %v423_v63, %v425_v11  ;;  %v1265_v20 = vunpack.i.h.bf16 %v1263_v12 }
  0x87   :  { %v156_v17 = vsel %vm154_vm15, %v1260_v15, %v1264_v14  ;;  %v155_v18 = vsel %vm154_vm15, %v1259_v16, %v1260_v15  ;;  %995 = vmatprep.subr.bf16.mxu1 %v1180_v3 }
  0x88   :  { %v1273_v6 = vpop.permute.xlu1 %1272  ;;  %v1268_v8 = vpop.permute.xlu0 %1267  ;;  %996 = vmatpush1.bf16.msra.mxu1 %v1179_v7 }
  0x89   :  { %v1270_v19 = vunpack.i.h.bf16 %v1268_v8  ;;  %v1275_v21 = vunpack.i.h.bf16 %v1273_v6  ;;  %v1274_v22 = vunpack.i.l.bf16 %v1273_v6  ;;  %v1269_v23 = vunpack.i.l.bf16 %v1268_v8 }
  0x8b   :  { %v157_v24 = vsel %vm154_vm15, %v1265_v20, %v1269_v23  ;;  %v158_v25 = vsel %vm154_vm15, %v1269_v23, %v1270_v19  ;;  %v450_v30 = vsel %vm154_vm15, %v1274_v22, %v1275_v21 }
  0x8c   :  { %v1283_v26 = vpop.permute.xlu1 %1282  ;;  %v1278_v27 = vpop.permute.xlu0 %1277  ;;  %v1474_v44 = vpack.c.bf16 %v158_v25, %v156_v17  ;;  %v1480_v52 = vpack.c.bf16 %v157_v24, %v155_v18 }
  0x8d   :  { %v1285_v28 = vunpack.i.h.bf16 %v1283_v26  ;;  %v1284_v29 = vunpack.i.l.bf16 %v1283_v26  ;;  %v1280_v31 = vunpack.i.h.bf16 %v1278_v27  ;;  %v1279_v32 = vunpack.i.l.bf16 %v1278_v27 }
  0x8e   :  { %1475 = vmatprep.subr.msk.bf16.mxu0 %vm1783_vm5, %v1474_v44 }
  0x8f   :  { %v453_v34 = vsel %vm154_vm15, %v1284_v29, %v1285_v28  ;;  %v452_v36 = vsel %vm154_vm15, %v1280_v31, %v1284_v29  ;;  %v451_v37 = vsel %vm154_vm15, %v1275_v21, %v1279_v32  ;;  %1481 = vmatpush1.bf16.msk.msra.mxu0 %vm1793_vm6, %v1480_v52 }
  0x90   :  { %v1293_v38 = vpop.permute.xlu1 %1292  ;;  %v1288_v39 = vpop.permute.xlu0 %1287  ;;  %v1483_v56 = vpack.c.bf16 %v453_v34, %v451_v37  ;;  %v1486_v57 = vpack.c.bf16 %v452_v36, %v450_v30 }
  0x91   :  { %v1294_v40 = vunpack.i.l.bf16 %v1293_v38  ;;  %v1290_v41 = vunpack.i.h.bf16 %v1288_v39  ;;  %v1289_v42 = vunpack.i.l.bf16 %v1288_v39  ;;  %v1295_v53 = vunpack.i.h.bf16 %v1293_v38 }
  0x92   :  { %1484 = vmatprep.subr.msk.bf16.mxu1 %vm1783_vm5, %v1483_v56 }
  0x93   :  { %v195_v45 = vsel %vm193_vm1, %v1290_v41, %v1294_v40  ;;  %v194_v46 = vsel %vm193_vm1, %v1289_v42, %v1290_v41  ;;  %1487 = vmatpush1.bf16.msk.msra.mxu1 %vm1793_vm6, %v1486_v57 }
  0x94   :  { %v1303_v47 = vpop.permute.xlu1 %1302  ;;  %v1298_v48 = vpop.permute.xlu0 %1297 }
  0x95   :  { %v1305_v49 = vunpack.i.h.bf16 %v1303_v47  ;;  %v1304_v50 = vunpack.i.l.bf16 %v1303_v47  ;;  %v1300_v54 = vunpack.i.h.bf16 %v1298_v48  ;;  %v1299_v55 = vunpack.i.l.bf16 %v1298_v48 }
  0x97   :  { %v488_v58 = vsel %vm193_vm1, %v1304_v50, %v1305_v49  ;;  %v196_v59 = vsel %vm193_vm1, %v1295_v53, %v1299_v55  ;;  %v197_v60 = vsel %vm193_vm1, %v1299_v55, %v1300_v54 }
  0x98   :  { %v1313_v61 = vpop.permute.xlu1 %1312  ;;  %v1308_v62 = vpop.permute.xlu0 %1307  ;;  %v1490_v14 = vpack.c.bf16 %v197_v60, %v195_v45  ;;  %v1494_v17 = vpack.c.bf16 %v196_v59, %v194_v46 }
  0x99   :  { %v1315_v63 = vunpack.i.h.bf16 %v1313_v61  ;;  %v1314_v0 = vunpack.i.l.bf16 %v1313_v61  ;;  %v1310_v1 = vunpack.i.h.bf16 %v1308_v62  ;;  %v1309_v2 = vunpack.i.l.bf16 %v1308_v62 }
  0x9a   :  { %1491 = vmatprep.subr.msk.bf16.mxu0 %vm1685_vm2, %v1490_v14 }
  0x9b   :  { %v491_v4 = vsel %vm193_vm1, %v1314_v0, %v1315_v63  ;;  %v490_v5 = vsel %vm193_vm1, %v1310_v1, %v1314_v0  ;;  %v489_v9 = vsel %vm193_vm1, %v1305_v49, %v1309_v2  ;;  %1495 = vmatpush1.bf16.msk.msra.mxu0 %vm1695_vm3, %v1494_v17 }
  0x9c   :  { %v223_v10 = vpop.permute.xlu1 %222  ;;  %v221_v11 = vpop.permute.xlu0 %220  ;;  %v1499_v8 = vpack.c.bf16 %v491_v4, %v489_v9  ;;  %v1502_v20 = vpack.c.bf16 %v490_v5, %v488_v58 }
  0x9d   :  { %v229_v12 = vrot.slane %v223_v10, 4  ;;  %v228_v13 = vrot.slane %v221_v11, 4 }
  0x9e   :  { %1500 = vmatprep.subr.msk.bf16.mxu1 %vm1685_vm2, %v1499_v8 }
  0x9f   :  { %v232_v15 = vsel %vm120_vm12, %v228_v13, %v229_v12  ;;  %1503 = vmatpush1.bf16.msk.msra.mxu1 %vm1695_vm3, %v1502_v20 }
  0xa0   :  { %v234_v16 = vsel %vm233_vm7, %v221_v11, %v232_v15  ;;  %v227_v3 = vpop.permute.xlu1 %226  ;;  %v225_v7 = vpop.permute.xlu0 %224 }
  0xa1   :  { %v231_v18 = vrot.slane %v227_v3, 4  ;;  %v230_v6 = vrot.slane %v225_v7, 4 }
  0xa3   :  { %v235_v19 = vsel %vm120_vm12, %v230_v6, %v231_v18 }
  0xa4   :  { %v236_v21 = vsel %vm233_vm7, %v225_v7, %v235_v19  ;;  %v517_v22 = vpop.permute.xlu1 %516  ;;  %v515_v23 = vpop.permute.xlu0 %514 }
  0xa5   :  { %v523_v24 = vrot.slane %v517_v22, 4  ;;  %v522_v25 = vrot.slane %v515_v23, 4  ;;  %v1190_v26 = vcombine.high %v234_v16, %v236_v21  ;;  %v1189_v27 = vcombine.low %v234_v16, %v236_v21 }
  0xa7   :  { %v526_v28 = vsel %vm120_vm12, %v522_v25, %v523_v24  ;;  %948 = vmatprep.subr.bf16.mxu0 %v1190_v26 }
  0xa8   :  { %v527_v29 = vsel %vm233_vm7, %v515_v23, %v526_v28  ;;  %v521_v30 = vpop.permute.xlu1 %520  ;;  %v519_v31 = vpop.permute.xlu0 %518  ;;  %949 = vmatpush1.bf16.msra.mxu0 %v1189_v27 }
  0xa9   :  { %v525_v32 = vrot.slane %v521_v30, 4  ;;  %v524_v34 = vrot.slane %v519_v31, 4 }
  0xab   :  { %v528_v36 = vsel %vm120_vm12, %v524_v34, %v525_v32 }
  0xac   :  { %v529_v37 = vsel %vm233_vm7, %v519_v31, %v528_v36  ;;  %v1323_v38 = vpop.permute.xlu1 %1322  ;;  %v1318_v39 = vpop.permute.xlu0 %1317 }
  0xad   :  { %v1324_v40 = vunpack.i.l.bf16 %v1323_v38  ;;  %v1320_v41 = vunpack.i.h.bf16 %v1318_v39  ;;  %v1319_v42 = vunpack.i.l.bf16 %v1318_v39  ;;  %v1192_v44 = vcombine.high %v527_v29, %v529_v37 }
  0xae   :  { %v1191_v45 = vcombine.low %v527_v29, %v529_v37  ;;  %v1325_v52 = vunpack.i.h.bf16 %v1323_v38 }
  0xaf   :  { %v255_v46 = vsel %vm253_vm8, %v1320_v41, %v1324_v40  ;;  %v254_v47 = vsel %vm253_vm8, %v1319_v42, %v1320_v41  ;;  %1001 = vmatprep.subr.bf16.mxu1 %v1192_v44 }
  0xb0   :  { %v1333_v48 = vpop.permute.xlu1 %1332  ;;  %v1328_v49 = vpop.permute.xlu0 %1327  ;;  %1002 = vmatpush1.bf16.msra.mxu1 %v1191_v45 }
  0xb1   :  { %v1330_v50 = vunpack.i.h.bf16 %v1328_v49  ;;  %v1335_v53 = vunpack.i.h.bf16 %v1333_v48  ;;  %v1334_v54 = vunpack.i.l.bf16 %v1333_v48  ;;  %v1329_v55 = vunpack.i.l.bf16 %v1328_v49 }
  0xb3   :  { %v256_v56 = vsel %vm253_vm8, %v1325_v52, %v1329_v55  ;;  %v257_v57 = vsel %vm253_vm8, %v1329_v55, %v1330_v50  ;;  %v546_v62 = vsel %vm253_vm8, %v1334_v54, %v1335_v53 }
  0xb4   :  { %v1343_v58 = vpop.permute.xlu1 %1342  ;;  %v1338_v59 = vpop.permute.xlu0 %1337  ;;  %v1506_v13 = vpack.c.bf16 %v257_v57, %v255_v46  ;;  %v1512_v18 = vpack.c.bf16 %v256_v56, %v254_v47 }
  0xb5   :  { %v1345_v60 = vunpack.i.h.bf16 %v1343_v58  ;;  %v1344_v61 = vunpack.i.l.bf16 %v1343_v58  ;;  %v1340_v63 = vunpack.i.h.bf16 %v1338_v59  ;;  %v1339_v0 = vunpack.i.l.bf16 %v1338_v59 }
  0xb6   :  { %1507 = vmatprep.subr.msk.bf16.mxu0 %vm1783_vm5, %v1506_v13 }
  0xb7   :  { %v549_v1 = vsel %vm253_vm8, %v1344_v61, %v1345_v60  ;;  %v548_v2 = vsel %vm253_vm8, %v1340_v63, %v1344_v61  ;;  %v547_v4 = vsel %vm253_vm8, %v1335_v53, %v1339_v0  ;;  %1513 = vmatpush1.bf16.msk.msra.mxu0 %vm1793_vm6, %v1512_v18 }
  0xb8   :  { %v1353_v5 = vpop.permute.xlu1 %1352  ;;  %v1348_v9 = vpop.permute.xlu0 %1347  ;;  %v1515_v20 = vpack.c.bf16 %v549_v1, %v547_v4  ;;  %v1518_v21 = vpack.c.bf16 %v548_v2, %v546_v62 }
  0xb9   :  { %v1354_v10 = vunpack.i.l.bf16 %v1353_v5  ;;  %v1350_v11 = vunpack.i.h.bf16 %v1348_v9  ;;  %v1349_v12 = vunpack.i.l.bf16 %v1348_v9  ;;  %v1355_v6 = vunpack.i.h.bf16 %v1353_v5 }
  0xba   :  { %1516 = vmatprep.subr.msk.bf16.mxu1 %vm1783_vm5, %v1515_v20 }
  0xbb   :  { %v294_v14 = vsel %vm292_vm9, %v1350_v11, %v1354_v10  ;;  %v293_v15 = vsel %vm292_vm9, %v1349_v12, %v1350_v11  ;;  %1519 = vmatpush1.bf16.msk.msra.mxu1 %vm1793_vm6, %v1518_v21 }
  0xbc   :  { %v1363_v16 = vpop.permute.xlu1 %1362  ;;  %v1358_v3 = vpop.permute.xlu0 %1357 }
  0xbd   :  { %v1365_v7 = vunpack.i.h.bf16 %v1363_v16  ;;  %v1364_v17 = vunpack.i.l.bf16 %v1363_v16  ;;  %v1360_v8 = vunpack.i.h.bf16 %v1358_v3  ;;  %v1359_v19 = vunpack.i.l.bf16 %v1358_v3  ;;  %v708_v3 = vld [vmem:[#allocation2 + $0x120] sm:$0x11] }
  0xbf   :  { %v584_v22 = vsel %vm292_vm9, %v1364_v17, %v1365_v7  ;;  %v295_v23 = vsel %vm292_vm9, %v1355_v6, %v1359_v19  ;;  %v296_v24 = vsel %vm292_vm9, %v1359_v19, %v1360_v8  ;;  %v1210_v19 = vcombine.high %v708_v3, %v708_v3 }
  0xc0   :  { %v1373_v25 = vpop.permute.xlu1 %1372  ;;  %v1368_v26 = vpop.permute.xlu0 %1367  ;;  %v1522_v40 = vpack.c.bf16 %v296_v24, %v294_v14  ;;  %v1526_v46 = vpack.c.bf16 %v295_v23, %v293_v15  ;;  %v1564_v24 = vmov 0  }
  0xc1   :  { %v1375_v27 = vunpack.i.h.bf16 %v1373_v25  ;;  %v1374_v28 = vunpack.i.l.bf16 %v1373_v25  ;;  %v1370_v29 = vunpack.i.h.bf16 %v1368_v26  ;;  %v1369_v30 = vunpack.i.l.bf16 %v1368_v26  ;;  %v709_v26 = vld [vmem:[#allocation2 + $0x128] sm:$0x11] }
  0xc2   :  { %1523 = vmatprep.subr.msk.bf16.mxu0 %vm1685_vm2, %v1522_v40  ;;  %v927_v25 = vsel %vm18_vm4, 65535, %v1564_v24  ;;  %v1099_v24 = vld [vmem:[%s1931_s1 + $0x8] sm:$0xff] }
  0xc3   :  { %v587_v31 = vsel %vm292_vm9, %v1374_v28, %v1375_v27  ;;  %v586_v32 = vsel %vm292_vm9, %v1370_v29, %v1374_v28  ;;  %v585_v34 = vsel %vm292_vm9, %v1365_v7, %v1369_v30  ;;  %1527 = vmatpush1.bf16.msk.msra.mxu0 %vm1695_vm3, %v1526_v46 }
  0xc4   :  { %v322_v36 = vpop.permute.xlu1 %321  ;;  %v320_v37 = vpop.permute.xlu0 %319  ;;  %v1531_v49 = vpack.c.bf16 %v587_v31, %v585_v34  ;;  %v1534_v52 = vpack.c.bf16 %v586_v32, %v584_v22  ;;  %v932_v34 = vand.u32 %v1210_v19, %v927_v25  ;;  %v1098_v19 = vld [vmem:[%s1931_s1] sm:$0xff] }
  0xc5   :  { %v328_v38 = vrot.slane %v322_v36, 4  ;;  %v327_v39 = vrot.slane %v320_v37, 4  ;;  %v1209_v36 = vcombine.low %v708_v3, %v708_v3 }
  0xc6   :  { %1532 = vmatprep.subr.msk.bf16.mxu1 %vm1685_vm2, %v1531_v49  ;;  %vm352_vm2 = vcmask 769024  }
  0xc7   :  { %v331_v41 = vsel %vm120_vm12, %v327_v39, %v328_v38  ;;  %1535 = vmatpush1.bf16.msk.msra.mxu1 %vm1695_vm3, %v1534_v52 }
  0xc8   :  { %v333_v42 = vsel %vm332_vm10, %v320_v37, %v331_v41  ;;  %v326_v44 = vpop.permute.xlu1 %325  ;;  %v324_v45 = vpop.permute.xlu0 %323  ;;  %v1212_v37 = vcombine.high %v709_v26, %v709_v26 }
  0xc9   :  { %v330_v47 = vrot.slane %v326_v44, 4  ;;  %v329_v48 = vrot.slane %v324_v45, 4  ;;  %v1211_v44 = vcombine.low %v709_v26, %v709_v26 }
  0xcb   :  { %v334_v50 = vsel %vm120_vm12, %v329_v48, %v330_v47  ;;  %v1408_v47 = vld [vmem:[%s1930_s2] ss:$8 sps:$4 sm:$0xff]   ;;  %v935_v49 = vand.u32 %v1211_v44, %v927_v25  ;;  %v1218_v44 = vld [vmem:[%s1931_s1 + $0x18] sm:$0xff] }
  0xcc   :  { %v335_v53 = vsel %vm332_vm10, %v324_v45, %v334_v50  ;;  %v613_v54 = vpop.permute.xlu1 %612  ;;  %v611_v55 = vpop.permute.xlu0 %610  ;;  %v938_v45 = vand.u32 %v1212_v37, %v927_v25  ;;  %v1413_v50 = vld [vmem:[%s1930_s2 + $0x14] ss:$8 sps:$4 sm:$0xff]  }
  0xcd   :  { %v619_v56 = vrot.slane %v613_v54, 4  ;;  %v618_v57 = vrot.slane %v611_v55, 4  ;;  %v1202_v58 = vcombine.high %v333_v42, %v335_v53  ;;  %v1201_v59 = vcombine.low %v333_v42, %v335_v53 }
  0xce   :  { %v929_v42 = vand.u32 %v1209_v36, %v927_v25 }
  0xcf   :  { %v622_v60 = vsel %vm120_vm12, %v618_v57, %v619_v56  ;;  %954 = vmatprep.subr.bf16.mxu0 %v1202_v58 }
  0xd0   :  { %v623_v33 = vsel %vm332_vm10, %v611_v55, %v622_v60  ;;  %v617_v61 = vpop.permute.xlu1 %616  ;;  %v615_v62 = vpop.permute.xlu0 %614  ;;  %955 = vmatpush1.bf16.msra.mxu0 %v1201_v59 }
  0xd1   :  { %v621_v63 = vrot.slane %v617_v61, 4  ;;  %v620_v0 = vrot.slane %v615_v62, 4 }
  0xd3   :  { %v624_v35 = vsel %vm120_vm12, %v620_v0, %v621_v63 }
  0xd4   :  { %v625_v1 = vsel %vm332_vm10, %v615_v62, %v624_v35  ;;  %v1383_v2 = vpop.permute.xlu1 %1382  ;;  %v1378_v4 = vpop.permute.xlu0 %1377 }
  0xd5   :  { %v1384_v5 = vunpack.i.l.bf16 %v1383_v2  ;;  %v1380_v9 = vunpack.i.h.bf16 %v1378_v4  ;;  %v1379_v10 = vunpack.i.l.bf16 %v1378_v4  ;;  %v1204_v11 = vcombine.high %v623_v33, %v625_v1 }
  0xd6   :  { %v1203_v12 = vcombine.low %v623_v33, %v625_v1  ;;  %v1385_v17 = vunpack.i.h.bf16 %v1383_v2 }
  0xd7   :  { %v354_v13 = vsel %vm352_vm2, %v1380_v9, %v1384_v5  ;;  %v353_v14 = vsel %vm352_vm2, %v1379_v10, %v1380_v9  ;;  %1007 = vmatprep.subr.bf16.mxu1 %v1204_v11 }
  0xd8   :  { %v1393_v15 = vpop.permute.xlu1 %1392  ;;  %v1388_v16 = vpop.permute.xlu0 %1387  ;;  %1008 = vmatpush1.bf16.msra.mxu1 %v1203_v12 }
  0xd9   :  { %v1390_v7 = vunpack.i.h.bf16 %v1388_v16  ;;  %v1395_v18 = vunpack.i.h.bf16 %v1393_v15  ;;  %v1394_v6 = vunpack.i.l.bf16 %v1393_v15  ;;  %v1389_v8 = vunpack.i.l.bf16 %v1388_v16 }
  0xdb   :  { %v355_v20 = vsel %vm352_vm2, %v1385_v17, %v1389_v8  ;;  %v356_v21 = vsel %vm352_vm2, %v1389_v8, %v1390_v7  ;;  %v642_v29 = vsel %vm352_vm2, %v1394_v6, %v1395_v18 }
  0xdc   :  { %v1403_v22 = vpop.permute.xlu1 %1402  ;;  %v1398_v23 = vpop.permute.xlu0 %1397  ;;  %v1539_v40 = vpack.c.bf16 %v356_v21, %v354_v13  ;;  %v1542_v41 = vpack.c.bf16 %v355_v20, %v353_v14 }
  0xdd   :  { %v1405_v27 = vunpack.i.h.bf16 %v1403_v22  ;;  %v1404_v28 = vunpack.i.l.bf16 %v1403_v22  ;;  %v1400_v30 = vunpack.i.h.bf16 %v1398_v23  ;;  %v1399_v31 = vunpack.i.l.bf16 %v1398_v23 }
  0xde   :  { %1540 = vmatprep.subr.msk.bf16.mxu0 %vm1783_vm5, %v1539_v40 }
  0xdf   :  { %v645_v32 = vsel %vm352_vm2, %v1404_v28, %v1405_v27  ;;  %v644_v38 = vsel %vm352_vm2, %v1400_v30, %v1404_v28  ;;  %v643_v39 = vsel %vm352_vm2, %v1395_v18, %v1399_v31  ;;  %1543 = vmatpush1.bf16.msk.msra.mxu0 %vm1793_vm6, %v1542_v41 }
  0xe0   :  { %958 = vmatprep.subr.bf16.mxu0 %v932_v34  ;;  %v1547_v46 = vpack.c.bf16 %v645_v32, %v643_v39  ;;  %v1550_v48 = vpack.c.bf16 %v644_v38, %v642_v29  ;;  %v1217_v39 = vld [vmem:[%s1931_s1 + $0x10] sm:$0xff] }
  0xe2   :  { %1548 = vmatprep.subr.msk.bf16.mxu1 %vm1783_vm5, %v1547_v46 }
  0xe3   :  { %959 = vmatpush1.bf16.msra.mxu0 %v929_v42  ;;  %1551 = vmatpush1.bf16.msk.msra.mxu1 %vm1793_vm6, %v1550_v48 }
  0xe4   :  { %1011 = vmatprep.subr.bf16.mxu1 %v938_v45 }
  0xe6   :  { %973 = vmatmul.mubr.bf16.vlgmr.msra.gmra.mrb[0].mxu0 %v1408_v47 }
  0xe7   :  { %1012 = vmatpush1.bf16.msra.mxu1 %v935_v49  ;;  %1214 = vmatprep.mubr.msk.bf16.mxu0 %vm918_vm11, %v1413_v50 }
  0xea   :  { %1026 = vmatmul.mubr.bf16.vlgmr.msra.gmra.mrb[0].mxu1 %v1408_v47 }
  0xeb   :  { %1216 = vmatprep.mubr.msk.bf16.mxu1 %vm918_vm11, %v1413_v50 }
  0xee   :  { %983 = vmatmul.mubr.bf16.gmra.mrb[4].mxu0 %v1415_v43 }
  0xf2   :  { %1036 = vmatmul.mubr.bf16.gmra.mrb[4].mxu1 %v1415_v43 }
 0x1b9   :  { %v974_v51 = vpop.f32.mrb[0].mxu0 }
 0x1ba   :  { %v1046_v52 = vmul.f32 0.5, %v974_v51  ;;  %v976_v53 = vpop.f32.mrb[1].mxu0 }
 0x1bb   :  { %v1047_v54 = vmul.f32 0.5, %v976_v53  ;;  %v978_v55 = vpop.f32.mrb[2].mxu0 }
 0x1bc   :  { %1416 = vtanh.f32 %v1046_v52  ;;  %v1062_v56 = vmul.f32 0.5, %v978_v55  ;;  %v980_v57 = vpop.f32.mrb[3].mxu0 }
 0x1bd   :  { %1418 = vtanh.f32 %v1047_v54  ;;  %v1063_v58 = vmul.f32 0.5, %v980_v57  ;;  %v1027_v59 = vpop.f32.mrb[0].mxu1 }
 0x1be   :  { %1420 = vtanh.f32 %v1062_v56  ;;  %v1048_v60 = vmul.f32 0.5, %v1027_v59  ;;  %v1029_v33 = vpop.f32.mrb[1].mxu1 }
 0x1bf   :  { %1422 = vtanh.f32 %v1063_v58  ;;  %v1049_v61 = vmul.f32 0.5, %v1029_v33  ;;  %v1031_v62 = vpop.f32.mrb[2].mxu1 }
 0x1c0   :  { %1424 = vtanh.f32 %v1048_v60  ;;  %v1064_v63 = vmul.f32 0.5, %v1031_v62  ;;  %v1033_v0 = vpop.f32.mrb[3].mxu1 }
 0x1c1   :  { %1426 = vtanh.f32 %v1049_v61  ;;  %v1065_v35 = vmul.f32 0.5, %v1033_v0  ;;  %v984_v1 = vpop.f32.mrb[4].mxu0 }
 0x1c2   :  { %1428 = vtanh.f32 %v1064_v63  ;;  %v986_v2 = vpop.f32.mrb[5].mxu0 }
 0x1c3   :  { %1430 = vtanh.f32 %v1065_v35  ;;  %v988_v4 = vpop.f32.mrb[6].mxu0 }
 0x1c4   :  { %1432 = vtanh.f32 %v984_v1  ;;  %v990_v5 = vpop.f32.mrb[7].mxu0  ;;  %v1082_v14 = vmul.f32 0.5, %v988_v4 }
 0x1c5   :  { %1434 = vtanh.f32 %v986_v2  ;;  %v1037_v9 = vpop.f32.mrb[4].mxu1  ;;  %v1083_v7 = vmul.f32 0.5, %v990_v5 }
 0x1c6   :  { %v1417_v10 = vpop.eup %1416  ;;  %v1039_v11 = vpop.f32.mrb[5].mxu1  ;;  %1436 = vtanh.f32 %v1037_v9 }
 0x1c7   :  { %v1419_v12 = vpop.eup %1418  ;;  %v1054_v13 = vmul.f32 0.5, %v1417_v10  ;;  %v1041_v15 = vpop.f32.mrb[6].mxu1  ;;  %1438 = vtanh.f32 %v1039_v11 }
 0x1c8   :  { %v1421_v16 = vpop.eup %1420  ;;  %v1055_v3 = vmul.f32 0.5, %v1419_v12  ;;  %v1043_v17 = vpop.f32.mrb[7].mxu1  ;;  %1440 = vtanh.f32 %v1082_v14  ;;  %v1084_v25 = vmul.f32 0.5, %v1041_v15 }
 0x1c9   :  { %v1423_v18 = vpop.eup %1422  ;;  %v1070_v6 = vmul.f32 0.5, %v1421_v16  ;;  %v1058_v22 = vadd.f32 0.5, %v1054_v13  ;;  %1442 = vtanh.f32 %v1083_v7  ;;  %v1085_v29 = vmul.f32 0.5, %v1043_v17 }
 0x1ca   :  { %v1425_v8 = vpop.eup %1424  ;;  %v1071_v20 = vmul.f32 0.5, %v1423_v18  ;;  %v1059_v27 = vadd.f32 0.5, %v1055_v3  ;;  %1444 = vtanh.f32 %v1084_v25 }
 0x1cb   :  { %v1427_v21 = vpop.eup %1426  ;;  %v1074_v23 = vadd.f32 0.5, %v1070_v6  ;;  %v1056_v32 = vmul.f32 0.5, %v1425_v8  ;;  %1446 = vtanh.f32 %v1085_v29 }
 0x1cc   :  { %v1429_v26 = vpop.eup %1428  ;;  %v1075_v28 = vadd.f32 0.5, %v1071_v20  ;;  %v1057_v38 = vmul.f32 0.5, %v1427_v21 }
 0x1cd   :  { %v1431_v30 = vpop.eup %1430  ;;  %v1103_v31 = vmul.f32 %v1098_v19, %v1074_v23  ;;  %v1072_v34 = vmul.f32 0.5, %v1429_v26  ;;  %v1060_v48 = vadd.f32 0.5, %v1056_v32 }
 0x1ce   :  { %v1433_v36 = vpop.eup %1432  ;;  %v1104_v37 = vmul.f32 %v1099_v24, %v1075_v28  ;;  %v1073_v40 = vmul.f32 0.5, %v1431_v30  ;;  %v1061_v51 = vadd.f32 0.5, %v1057_v38 }
 0x1cf   :  { %v1435_v41 = vpop.eup %1434  ;;  %v1076_v42 = vadd.f32 0.5, %v1072_v34  ;;  %v1107_v45 = vmul.f32 %v1433_v36, %v1058_v22 }
 0x1d0   :  { %v1077_v46 = vadd.f32 0.5, %v1073_v40  ;;  %v1108_v47 = vmul.f32 %v1435_v41, %v1059_v27  ;;  %v1437_v43 = vpop.eup %1436 }
 0x1d1   :  { %v1105_v49 = vmul.f32 %v1217_v39, %v1076_v42  ;;  %v1111_v50 = vadd.f32 %v1107_v45, %v1103_v31  ;;  %v1439_v54 = vpop.eup %1438  ;;  %v1109_v55 = vmul.f32 %v1437_v43, %v1060_v48 }
 0x1d2   :  { %v1106_v52 = vmul.f32 %v1218_v44, %v1077_v46  ;;  %v1112_v53 = vadd.f32 %v1108_v47, %v1104_v37  ;;  %v1110_v56 = vmul.f32 %v1439_v54, %v1061_v51  ;;  %v1441_v57 = vpop.eup %1440 }
 0x1d3   :  { %1448 = vtanh.f32 %v1111_v50  ;;  %1125 = vst [vmem:[%s1932_s4] sm:$0xff] %v1111_v50  ;;  %v1113_v58 = vadd.f32 %v1109_v55, %v1105_v49  ;;  %v1443_v59 = vpop.eup %1442  ;;  %v1090_v33 = vmul.f32 0.5, %v1441_v57 }
 0x1d4   :  { %1450 = vtanh.f32 %v1112_v53  ;;  %1126 = vst [vmem:[%s1932_s4 + $0x8] sm:$0xff] %v1112_v53  ;;  %v1114_v60 = vadd.f32 %v1110_v56, %v1106_v52  ;;  %v1445_v61 = vpop.eup %1444  ;;  %v1091_v62 = vmul.f32 0.5, %v1443_v59 }
 0x1d5   :  { %1452 = vtanh.f32 %v1113_v58  ;;  %1221 = vst [vmem:[%s1932_s4 + $0x10] sm:$0xff] %v1113_v58  ;;  %v1447_v63 = vpop.eup %1446  ;;  %v1094_v0 = vadd.f32 0.5, %v1090_v33  ;;  %v1092_v35 = vmul.f32 0.5, %v1445_v61 }
 0x1d6   :  { %1454 = vtanh.f32 %v1114_v60  ;;  %1222 = vst [vmem:[%s1932_s4 + $0x18] sm:$0xff] %v1114_v60  ;;  %v1095_v2 = vadd.f32 0.5, %v1091_v62  ;;  %v1093_v4 = vmul.f32 0.5, %v1447_v63 }
 0x1d7   :  { %v1096_v11 = vadd.f32 0.5, %v1092_v35 }
 0x1d8   :  { %v1097_v13 = vadd.f32 0.5, %v1093_v4 }
 0x1dd   :  { %v1449_v1 = vpop.eup %1448 }
 0x1de   :  { %v1451_v5 = vpop.eup %1450  ;;  %v1119_v9 = vmul.f32 %v1449_v1, %v1094_v0 }
 0x1df   :  { %v1120_v10 = vmul.f32 %v1451_v5, %v1095_v2  ;;  %v1453_v12 = vpop.eup %1452 }
 0x1e0   :  { %1123 = vst [vmem:[%s1933_s3] sm:$0xff] %v1119_v9  ;;  %v1455_v14 = vpop.eup %1454  ;;  %v1121_v15 = vmul.f32 %v1453_v12, %v1096_v11 }
 0x1e1   :  { %1124 = vst [vmem:[%s1933_s3 + $0x8] sm:$0xff] %v1120_v10  ;;  %v1122_v16 = vmul.f32 %v1455_v14, %v1097_v13 }
 0x1e2   :  { %1219 = vst [vmem:[%s1933_s3 + $0x10] sm:$0xff] %v1121_v15 }
 0x1e3   :  { %1220 = vst [vmem:[%s1933_s3 + $0x18] sm:$0xff] %v1122_v16 }

</bundles_post_ra>
